<compile_context>
chip_gen: v6e
topology: v6e:2x2x1
jax: 0.10.0
libtpu: 0.0.40
codegen_flags: <defaults>
</compile_context>

<pallas_src>
import functools

import jax
import jax.numpy as jnp
from jax.experimental import pallas as pl
from jax.experimental.pallas import tpu as pltpu


def _cdiv(a, b):
    return -(-a // b)


def _round_up(x, m):
    return ((x + m - 1) // m) * m


def _fast_gelu(h):
    # x * sigmoid(1.702 * x); exp goes to the EUP, mul to the VPU.
    return h * (1.0 / (1.0 + jnp.exp(-1.702 * h)))


def _vmem_capacity_bytes():
    try:
        return int(pltpu.get_tpu_info().vmem_capacity_bytes)
    except Exception:
        return 64 << 20  # conservative default (v7x per-TC VMEM)


def _pick_chunk(i_dim, target=2048):
    """Largest divisor of i_dim that is <= target and a multiple of 128."""
    if i_dim <= target:
        return i_dim
    for cand in range(target, 127, -128):
        if i_dim % cand == 0:
            return cand
    return i_dim


def _const_spec(shape, grid_ndims):
    """BlockSpec for a grid-invariant (resident) operand, single-buffered."""
    zeros = (0,) * len(shape)
    if grid_ndims == 1:
        idx = lambda i: zeros
    else:
        idx = lambda i, j: zeros
    if hasattr(pl, "Buffered"):
        try:
            return pl.BlockSpec(shape, idx, pipeline_mode=pl.Buffered(1))
        except TypeError:
            pass
    return pl.BlockSpec(shape, idx)


# ----------------------------------------------------------------------------
# Kernels
# ----------------------------------------------------------------------------
def _bert_ff_resident_kernel(x_ref, w1_ref, b1_ref, w2_ref, b2_ref, o_ref,
                             *, mxu_dtype, ck):
    """Both weights resident in VMEM; intermediate dim chunked in-kernel."""
    x = x_ref[...]                                  # (tm, H), input dtype
    x_lo = x.astype(mxu_dtype)                      # bf16 MXU operand
    tm = x.shape[0]
    i_dim = w1_ref.shape[1]
    h_dim = w2_ref.shape[1]

    y = jnp.zeros((tm, h_dim), jnp.float32)
    # Chunk I so the live f32 intermediate is (tm, ck) instead of (tm, I).
    # Weights are VMEM-resident, so chunking generates no extra DMA.
    for c in range(i_dim // ck):
        s = c * ck
        h = jnp.dot(x_lo, w1_ref[:, pl.ds(s, ck)],
                    preferred_element_type=jnp.float32)
        h = _fast_gelu(h + b1_ref[:, pl.ds(s, ck)])
        y = y + jnp.dot(h.astype(mxu_dtype), w2_ref[pl.ds(s, ck), :],
                        preferred_element_type=jnp.float32)

    # Bias + residual in f32.  Dropout is the identity at inference time.
    y = y + b2_ref[...] + x.astype(jnp.float32)
    o_ref[...] = y.astype(o_ref.dtype)


def _bert_ff_stream_kernel(x_ref, w1_ref, b1_ref, w2_ref, b2_ref, o_ref,
                           acc_ref, *, mxu_dtype):
    """Fallback: weight slabs streamed over an 'arbitrary' I grid axis."""
    j = pl.program_id(1)

    @pl.when(j == 0)
    def _():
        acc_ref[...] = jnp.zeros_like(acc_ref)

    x_lo = x_ref[...].astype(mxu_dtype)
    h = jnp.dot(x_lo, w1_ref[...], preferred_element_type=jnp.float32)
    h = _fast_gelu(h + b1_ref[...])
    acc_ref[...] += jnp.dot(h.astype(mxu_dtype), w2_ref[...],
                            preferred_element_type=jnp.float32)

    @pl.when(j == pl.num_programs(1) - 1)
    def _():
        y = acc_ref[...] + b2_ref[...] + x_ref[...].astype(jnp.float32)
        o_ref[...] = y.astype(o_ref.dtype)


# ----------------------------------------------------------------------------
# Wrappers
# ----------------------------------------------------------------------------
def prepare_bert_ff_params(w1_t, b1, w2_t, b2, *, mxu_dtype=jnp.bfloat16):
    """One-time (weight-load-time) conversion so bert_ff does zero per-call
    weight-cast HBM traffic.  w1_t: [H, I] (pre-transposed), w2_t: [I, H]."""
    h_dim, i_dim = w1_t.shape
    return (w1_t.astype(mxu_dtype),
            b1.reshape(1, i_dim).astype(jnp.float32),
            w2_t.astype(mxu_dtype),
            b2.reshape(1, h_dim).astype(jnp.float32))


def bert_ff(x, w1_t, b1, w2_t, b2, *, tm=None, mxu_dtype=jnp.bfloat16,
            force_stream=False, stream_ti=None):
    """Fused BERT feed-forward block.

    x    : [B, S, H]  activations (also the residual)
    w1_t : [H, I]     dense1 weight, pre-transposed (PyTorch stores [I, H])
    b1   : [I] or [1, I]
    w2_t : [I, H]     dense2 weight, pre-transposed (PyTorch stores [H, I])
    b2   : [H] or [1, H]
    """
    B, S, H = x.shape
    I = w1_t.shape[1]
    assert w1_t.shape == (H, I) and w2_t.shape == (I, H)

    # No-ops if the caller already passed prepare_bert_ff_params output.
    w1c = w1_t.astype(mxu_dtype)
    w2c = w2_t.astype(mxu_dtype)
    b1r = b1.reshape(1, I).astype(jnp.float32)
    b2r = b2.reshape(1, H).astype(jnp.float32)

    M = B * S
    x2d = x.reshape(M, H)
    xb = jnp.dtype(x.dtype).itemsize
    wb = jnp.dtype(mxu_dtype).itemsize

    vmem_cap = _vmem_capacity_bytes()
    budget = max(vmem_cap - (8 << 20), 16 << 20)    # leave Mosaic headroom

    # Row tile: 512 on 128-MiB-VMEM chips (v5e/v6e), 256 on v7x (64 MiB).
    if tm is None:
        tm = 512 if vmem_cap >= (100 << 20) else 256
    tm = max(8, min(tm, _round_up(M, 8)))
    # Keep >= 2 grid steps on the parallel M axis where possible so both v7x
    # TensorCores get work (one extra ~0.35us step is harmless on 1-TC chips).
    if M >= 16 and _cdiv(M, tm) < 2:
        tm = max(8, _round_up(_cdiv(M, 2), 8))

    weight_bytes = (w1c.size + w2c.size) * wb + (b1r.size + b2r.size) * 4
    resident_ok = (not force_stream) and weight_bytes <= int(0.45 * budget)

    flops = 4 * M * H * I
    transcendentals = M * I

    if resident_ok:
        # --------------------------- resident-weight path --------------------
        ck = _pick_chunk(I, target=2048)

        def need(t):
            return (weight_bytes                      # single-buffered weights
                    + 4 * t * H * xb                  # x + out, double-buffered
                    + t * H * (2 + 4)                 # x bf16 + y f32 in-kernel
                    + t * ck * (4 + 2))               # h f32 + h bf16 chunk

        while tm > 8 and need(tm) > budget:
            tm = max(8, _round_up(tm // 2, 8))
        grid = (_cdiv(M, tm),)
        vmem_limit = int(min(max(int(need(tm) * 1.3) + (2 << 20), 16 << 20),
                             budget))
        cost = pl.CostEstimate(
            flops=flops, transcendentals=transcendentals,
            bytes_accessed=2 * M * H * xb + weight_bytes)

        # NOTE: partial last M tile is safe unpadded -- every output row
        # depends only on its own input row, and OOB-row writes are masked.
        out2d = pl.pallas_call(
            functools.partial(_bert_ff_resident_kernel,
                              mxu_dtype=mxu_dtype, ck=ck),
            out_shape=jax.ShapeDtypeStruct((M, H), x.dtype),
            grid_spec=pltpu.PrefetchScalarGridSpec(
                num_scalar_prefetch=0,
                grid=grid,
                in_specs=[
                    pl.BlockSpec((tm, H), lambda i: (i, 0)),   # x tile (LHS+res)
                    _const_spec((H, I), 1),                    # W1 resident
                    _const_spec((1, I), 1),                    # b1
                    _const_spec((I, H), 1),                    # W2 resident
                    _const_spec((1, H), 1),                    # b2
                ],
                out_specs=pl.BlockSpec((tm, H), lambda i: (i, 0)),
            ),
            compiler_params=pltpu.CompilerParams(
                dimension_semantics=("parallel",),
                vmem_limit_bytes=vmem_limit,
            ),
            cost_estimate=cost,
            input_output_aliases={0: 0},               # reuse x HBM buffer
        )(x2d, w1c, b1r, w2c, b2r)
    else:
        # ------------------------ streamed-weight fallback --------------------
        ti = stream_ti if stream_ti is not None else _pick_chunk(I, target=1024)
        assert I % ti == 0, "stream tile must divide I (avoids OOB columns)"

        def need(t):
            return (2 * 2 * H * ti * wb               # W1/W2 slabs, 2-buffered
                    + 2 * ti * 4 + H * 4              # bias slabs
                    + 4 * t * H * xb                  # x + out, double-buffered
                    + t * H * (4 + 2)                 # acc f32 + x bf16
                    + t * ti * (4 + 2))               # h f32 + h bf16

        while tm > 8 and need(tm) > budget:
            tm = max(8, _round_up(tm // 2, 8))
        grid = (_cdiv(M, tm), I // ti)
        vmem_limit = int(min(max(int(need(tm) * 1.3) + (2 << 20), 16 << 20),
                             budget))
        cost = pl.CostEstimate(
            flops=flops, transcendentals=transcendentals,
            bytes_accessed=2 * M * H * xb + weight_bytes * grid[0])

        out2d = pl.pallas_call(
            functools.partial(_bert_ff_stream_kernel, mxu_dtype=mxu_dtype),
            out_shape=jax.ShapeDtypeStruct((M, H), x.dtype),
            grid_spec=pltpu.PrefetchScalarGridSpec(
                num_scalar_prefetch=0,
                grid=grid,
                in_specs=[
                    pl.BlockSpec((tm, H), lambda i, j: (i, 0)),   # x tile
                    pl.BlockSpec((H, ti), lambda i, j: (0, j)),   # W1 slab
                    pl.BlockSpec((1, ti), lambda i, j: (0, j)),   # b1 slab
                    pl.BlockSpec((ti, H), lambda i, j: (j, 0)),   # W2 slab
                    _const_spec((1, H), 2),                       # b2
                ],
                out_specs=pl.BlockSpec((tm, H), lambda i, j: (i, 0)),
                scratch_shapes=[pltpu.VMEM((tm, H), jnp.float32)],
            ),
            compiler_params=pltpu.CompilerParams(
                dimension_semantics=("parallel", "arbitrary"),
                vmem_limit_bytes=vmem_limit,
            ),
            cost_estimate=cost,
            input_output_aliases={0: 0},
        )(x2d, w1c, b1r, w2c, b2r)

    return out2d.reshape(B, S, H)


# ----------------------------------------------------------------------------
# References
# ----------------------------------------------------------------------------
def reference_bf16(x, w1_t, b1, w2_t, b2, mxu_dtype=jnp.bfloat16):
    # Same numerics as the kernel: bf16 MXU operands, f32 accumulation.
    B, S, H = x.shape
    x2d = x.reshape(-1, H)
    h = jnp.dot(x2d.astype(mxu_dtype), w1_t.astype(mxu_dtype),
                preferred_element_type=jnp.float32)
    h = _fast_gelu(h + b1.astype(jnp.float32))
    y = jnp.dot(h.astype(mxu_dtype), w2_t.astype(mxu_dtype),
                preferred_element_type=jnp.float32)
    y = y + b2.astype(jnp.float32) + x2d.astype(jnp.float32)
    return y.reshape(x.shape).astype(x.dtype)


def reference_f32(x, w1_t, b1, w2_t, b2):
    h = jnp.einsum("bsh,hi->bsi", x, w1_t) + b1
    h = _fast_gelu(h)
    y = jnp.einsum("bsi,ih->bsh", h, w2_t) + b2
    return y + x


if __name__ == "__main__":
    # Small ALBERT-style config: hidden_size=32, intermediate_size=128.
    B, S = 2, 8
    hidden_size, intermediate_size = 32, 128

    key = jax.random.PRNGKey(0)
    k_x, k_w1, k_b1, k_w2, k_b2, k_w1b, k_b1b, k_w2b = jax.random.split(key, 8)

    x = jax.random.normal(k_x, (B, S, hidden_size), dtype=jnp.float32)
    # PyTorch Linear stores weight as [out, in]; we keep it pre-transposed [in, out].
    w1_t = 0.02 * jax.random.normal(k_w1, (hidden_size, intermediate_size), jnp.float32)
    b1 = 0.01 * jax.random.normal(k_b1, (intermediate_size,), jnp.float32)
    w2_t = 0.02 * jax.random.normal(k_w2, (intermediate_size, hidden_size), jnp.float32)
    b2 = 0.01 * jax.random.normal(k_b2, (hidden_size,), jnp.float32)

    # Pure-JAX references first.
    ref_lo = reference_bf16(x, w1_t, b1, w2_t, b2)
    ref_hi = reference_f32(x, w1_t, b1, w2_t, b2)

    # One-time weight preparation (hoisted out of the per-call path).
    params = prepare_bert_ff_params(w1_t, b1, w2_t, b2)
    out = jax.block_until_ready(bert_ff(x, *params))
    assert out.shape == (B, S, hidden_size)
    assert jnp.allclose(out, ref_lo, atol=2e-3, rtol=2e-3), "resident path: mismatch vs bf16 reference"
    assert jnp.allclose(out, ref_hi, atol=3e-2, rtol=3e-2), "resident path: mismatch vs f32 reference"

    # Exercise the streamed-weight fallback (used when the weights would not
    # comfortably fit resident in VMEM) on a wider intermediate dim.
    I2 = 256
    w1b = 0.02 * jax.random.normal(k_w1b, (hidden_size, I2), jnp.float32)
    b1b = 0.01 * jax.random.normal(k_b1b, (I2,), jnp.float32)
    w2b = 0.02 * jax.random.normal(k_w2b, (I2, hidden_size), jnp.float32)
    out2 = jax.block_until_ready(
        bert_ff(x, w1b, b1b, w2b, b2, force_stream=True, stream_ti=128))
    ref2 = reference_f32(x, w1b, b1b, w2b, b2)
    assert jnp.allclose(out2, ref2, atol=3e-2, rtol=3e-2), "stream path: mismatch vs f32 reference"

    # TODO(synk): dropout implemented as identity (inference); training-mode
    # dropout would use pltpu.prng_seed + pltpu.prng_random_bits for the mask.
    print("KERNEL_OK")
</pallas_src>

<mosaic_0001>
module attributes {stable_mosaic.version = 11 : i64} {
  func.func @_bert_ff_resident_kernel(%arg0: i32, %arg1: memref<8x32xf32, #tpu.memory_space<vmem>>, %arg2: memref<32x128xbf16, #tpu.memory_space<vmem>>, %arg3: memref<1x128xf32, #tpu.memory_space<vmem>>, %arg4: memref<128x32xbf16, #tpu.memory_space<vmem>>, %arg5: memref<1x32xf32, #tpu.memory_space<vmem>>, %arg6: memref<8x32xf32, #tpu.memory_space<vmem>>) attributes {dimension_semantics = [#tpu.dimension_semantics<parallel>], iteration_bounds = array<i64: 2>, scalar_prefetch = 0 : i64, scratch_operands = 0 : i64, tpu.core_type = #tpu.core_type<tc>, window_params = [{transform_indices = @transform_0, window_bounds = array<i64: 8, 32>}, {pipeline_mode = #tpu.pipeline_mode<synchronous>, transform_indices = @transform_1, window_bounds = array<i64: 32, 128>}, {pipeline_mode = #tpu.pipeline_mode<synchronous>, transform_indices = @transform_2, window_bounds = array<i64: 1, 128>}, {pipeline_mode = #tpu.pipeline_mode<synchronous>, transform_indices = @transform_3, window_bounds = array<i64: 128, 32>}, {pipeline_mode = #tpu.pipeline_mode<synchronous>, transform_indices = @transform_4, window_bounds = array<i64: 1, 32>}, {transform_indices = @transform_5, window_bounds = array<i64: 8, 32>}]} {
    %c0 = arith.constant 0 : index
    %c0_0 = arith.constant 0 : index
    %0 = vector.load %arg1[%c0, %c0_0] : memref<8x32xf32, #tpu.memory_space<vmem>>, vector<8x32xf32>
    %1 = arith.truncf %0 : vector<8x32xf32> to vector<8x32xbf16>
    %cst = arith.constant 0.000000e+00 : f32
    %2 = vector.broadcast %cst : f32 to vector<8x32xf32>
    %c0_1 = arith.constant 0 : index
    %c0_2 = arith.constant 0 : index
    %3 = vector.load %arg2[%c0_1, %c0_2] : memref<32x128xbf16, #tpu.memory_space<vmem>>, vector<32x128xbf16>
    %cst_3 = arith.constant dense<0.000000e+00> : vector<8x128xf32>
    %4 = tpu.matmul %1, %3, %cst_3 {dimension_numbers = #tpu.dot_dimension_numbers<[1], [0], [0], [1], [0, 0, 1, 1], [], []>} : vector<8x32xbf16>, vector<32x128xbf16>, vector<8x128xf32> -> vector<8x128xf32>
    %c0_4 = arith.constant 0 : index
    %c0_5 = arith.constant 0 : index
    %5 = vector.load %arg3[%c0_4, %c0_5] : memref<1x128xf32, #tpu.memory_space<vmem>>, vector<1x128xf32>
    %6 = vector.broadcast %5 : vector<1x128xf32> to vector<8x128xf32>
    %7 = arith.addf %4, %6 : vector<8x128xf32>
    %cst_6 = arith.constant -1.702000e+00 : f32
    %8 = vector.broadcast %cst_6 : f32 to vector<8x128xf32>
    %9 = arith.mulf %8, %7 : vector<8x128xf32>
    %10 = math.exp %9 : vector<8x128xf32>
    %cst_7 = arith.constant 1.000000e+00 : f32
    %11 = vector.broadcast %cst_7 : f32 to vector<8x128xf32>
    %12 = arith.addf %11, %10 : vector<8x128xf32>
    %cst_8 = arith.constant 1.000000e+00 : f32
    %13 = vector.broadcast %cst_8 : f32 to vector<8x128xf32>
    %14 = arith.divf %13, %12 : vector<8x128xf32>
    %15 = arith.mulf %7, %14 : vector<8x128xf32>
    %16 = arith.truncf %15 : vector<8x128xf32> to vector<8x128xbf16>
    %c0_9 = arith.constant 0 : index
    %c0_10 = arith.constant 0 : index
    %17 = vector.load %arg4[%c0_9, %c0_10] : memref<128x32xbf16, #tpu.memory_space<vmem>>, vector<128x32xbf16>
    %cst_11 = arith.constant dense<0.000000e+00> : vector<8x32xf32>
    %18 = tpu.matmul %16, %17, %cst_11 {dimension_numbers = #tpu.dot_dimension_numbers<[1], [0], [0], [1], [0, 0, 1, 1], [], []>} : vector<8x128xbf16>, vector<128x32xbf16>, vector<8x32xf32> -> vector<8x32xf32>
    %19 = arith.addf %2, %18 : vector<8x32xf32>
    %c0_12 = arith.constant 0 : index
    %c0_13 = arith.constant 0 : index
    %20 = vector.load %arg5[%c0_12, %c0_13] : memref<1x32xf32, #tpu.memory_space<vmem>>, vector<1x32xf32>
    %21 = vector.broadcast %20 : vector<1x32xf32> to vector<8x32xf32>
    %22 = arith.addf %19, %21 : vector<8x32xf32>
    %23 = arith.addf %22, %0 : vector<8x32xf32>
    %c0_14 = arith.constant 0 : index
    %c0_15 = arith.constant 0 : index
    %24 = vector.load %arg6[%c0_14, %c0_15] : memref<8x32xf32, #tpu.memory_space<vmem>>, vector<8x32xf32>
    tpu.vector_store %arg6[%c0_14, %c0_15], %23 {strides = array<i32>} : memref<8x32xf32, #tpu.memory_space<vmem>>, vector<8x32xf32>,
    return
  }
  func.func @transform_0(%arg0: i32) -> (i32, i32) {
    %c0_i32 = arith.constant 0 : i32
    %c0_i32_0 = arith.constant 0 : i32
    return %arg0, %c0_i32 : i32, i32
  }
  func.func @transform_1(%arg0: i32) -> (i32, i32) {
    %c0_i32 = arith.constant 0 : i32
    %c0_i32_0 = arith.constant 0 : i32
    %c0_i32_1 = arith.constant 0 : i32
    return %c0_i32, %c0_i32_0 : i32, i32
  }
  func.func @transform_2(%arg0: i32) -> (i32, i32) {
    %c0_i32 = arith.constant 0 : i32
    %c0_i32_0 = arith.constant 0 : i32
    %c0_i32_1 = arith.constant 0 : i32
    return %c0_i32, %c0_i32_0 : i32, i32
  }
  func.func @transform_3(%arg0: i32) -> (i32, i32) {
    %c0_i32 = arith.constant 0 : i32
    %c0_i32_0 = arith.constant 0 : i32
    %c0_i32_1 = arith.constant 0 : i32
    return %c0_i32, %c0_i32_0 : i32, i32
  }
  func.func @transform_4(%arg0: i32) -> (i32, i32) {
    %c0_i32 = arith.constant 0 : i32
    %c0_i32_0 = arith.constant 0 : i32
    %c0_i32_1 = arith.constant 0 : i32
    return %c0_i32, %c0_i32_0 : i32, i32
  }
  func.func @transform_5(%arg0: i32) -> (i32, i32) {
    %c0_i32 = arith.constant 0 : i32
    %c0_i32_0 = arith.constant 0 : i32
    return %arg0, %c0_i32 : i32, i32
  }
}

</mosaic_0001>

<bundles_post_ra>
// kernel: tpu_custom_call.1
= control target key start
LH: loop header
LB: loop body
LE: loop exit
PB: predicated region body
PF: predicated region fallthrough
CT: control target
= control target key end

     0   :  { %10 = vsyncpa [#allocation3], 0  ;;  %s965_s0 = inlined_call_operand.hbm [shape: f32[16,32], index: 0, kind: input, shape index: {}, may-alias: {0,5}]   ;;  %s966_s1 = inlined_call_operand.vmem [shape: bf16[32,128], index: 1, kind: input, shape index: {}]   ;;  %s967_s2 = inlined_call_operand.vmem [shape: f32[1,128], index: 2, kind: input, shape index: {}]   ;;  %s968_s3 = inlined_call_operand.vmem [shape: bf16[128,32], index: 3, kind: input, shape index: {}]   ;;  %s969_s4 = inlined_call_operand.vmem [shape: f32[1,32], index: 4, kind: input, shape index: {}]   ;;  %s970_s5 = inlined_call_operand.hbm [shape: f32[16,32], index: 5, kind: output, shape index: {}, may-alias: {0,5}]  }
   0x1   :  { %12 = vsyncpa [#allocation3 + $0x1], 0 }
   0x2   :  { %13 = vsyncpa [#allocation4], 0 }
   0x3   :  { %15 = vsyncpa [#allocation4 + $0x1], 0  ;;  %s770_s18 = smov 0   ;;  %s772_s19 = smov 0  }
   0x4   :  { %s774_s20 = smov 0   ;;  %s776_s21 = smov 0  }
   0x5 LB: > { %s791_s22 = sadd.s32 4294967295, %s734_s21   ;;  %s515_s23 = sadd.s32 4294967294, %s734_s21   ;;  %s734_s21 = sphi %s776_s21, %s987_s21   ;;  %s730_s20 = sphi %s774_s20, %s986_s20   ;;  %s726_s19 = sphi %s772_s19, %s985_s19   ;;  %s722_s18 = sphi %s770_s18, %s984_s18  }
   0x6   : > { %s795_s24 = sadd.s32 1, %s734_s21   ;;  %s28_s25 = sadd.s32 1, %s730_s20 }
   0x7   : > { %s25_s26 = ssub.s32 %s734_s21, %s795_s24  ;;  %p35_p0 = scmp.ne.s32.totalorder %s730_s20, %s726_s19 }
   0x8   : > { %p26_p1 = scmp.eq.s32.totalorder %s25_s26, 0  ;;  %p36_p2 = scmp.eq.s32.totalorder %s734_s21, 0 }
   0x9   : > { %p41_p3 = scmp.ne.s32.totalorder %s726_s19, %s722_s18  ;;  %p42_p4 = scmp.eq.s32.totalorder %s791_s22, 0 }
   0xa   : > { %s807_s27 = scalar_select %p26_p1, %s730_s20, %s28_s25  }
   0xb   : > { %p809_p5 = por %p36_p2, %p35_p0  ;;  %p813_p6 = por %p42_p4, %p41_p3 }
   0xc   : > { %p149_p7 = scmp.eq.s32.totalorder %s791_s22, 1  ;;  %p155_p8 = scmp.eq.s32.totalorder %s515_s23, 1 }
   0xd   : > { %s974_s29 = scalar_select %p813_p6, 1, 0 }
   0xe   : > { %p592_p10 = scmp.lt.s32.totalorder %s734_s21, 2  ;;  %p820_p11 = por %p149_p7, %p35_p0 }
   0xf   : > { %p824_p12 = por %p155_p8, %p41_p3  ;;  %s187_s7 = sand.u32 1, %s730_s20  }
  0x10   : > { %s975_s30 = scalar_select %p820_p11, 1, 0 }
  0x11   : > { %s976_s6 = scalar_select %p824_p12, 1, 0 }
  0x12   : > { %s519_s8 = sshll.u32 %s734_s21, 7  ;;  %s518_s9 = sshll.u32 %s187_s7, 3 }
  0x13   : > { %s833_s12 = scalar_lea.hbm %s965_s0, %s519_s8  ;;  %s191_s13 = scalar_lea.vmem [#allocation2], %s518_s9 }
  0x14   : > { %s198_s14 = sshll.u32 %s191_s13, 4  ;;  %p837_p13 = pnand %p592_p10, %p809_p5  ;;  %s841_s14 = int_to_ptr.vmem [resolvable:$true] %s198_s14 }
  0x15   : > { %s188_s16 = scalar_lea.sflag [#allocation3], %s187_s7  ;;  %s642_s17 = scalar_lea.hbm %s833_s12, 128 }
  0x16   : > { %p643_p2 = scmp.ne.s32.totalorder %s833_s12, %s642_s17  ;;  %p644_p3 = pneg %p837_p13 }
  0x17   : > { %s647_s26 = scalar_lea.hbm %s965_s0, 256  ;;  %p648_p5 = scmp.lt.s32.totalorder %s833_s12, %s965_s0 }
  0x18   : > { %p645_p4 = pnand %p644_p3, %p643_p2  ;;  %p649_p8 = scmp.lt.s32.totalorder %s647_s26, %s642_s17 }
  0x1a   : > { %p646_p7 = pneg %p645_p4  ;;  %p650_p10 = por %p649_p8, %p648_p5 }
  0x1c   : > { %p651_p9 = pnand %p650_p10, %p646_p7 }
  0x1e   : > { %654 = shalt.err (!%p651_p9)
}
  0x1f   : > { %s655_s7 = scalar_lea.vmem %s841_s14, 128  ;;  %s736_s9 = smov [#allocation2]  }
  0x20   : > { %p656_p0 = scmp.ne.s32.totalorder %s841_s14, %s655_s7  ;;  %s660_s10 = sshll.u32 %s736_s9, 4  ;;  %s661_s10 = int_to_ptr.vmem [resolvable:$false] %s660_s10 }
  0x21   : > { %s662_s11 = scalar_lea.vmem %s661_s10, 256  ;;  %p663_p4 = scmp.lt.s32.totalorder %s841_s14, %s661_s10 }
  0x22   : > { %p658_p1 = pnand %p656_p0, %p644_p3  ;;  %p664_p12 = scmp.lt.s32.totalorder %s662_s11, %s655_s7 }
  0x24   : > { %p659_p2 = pneg %p658_p1  ;;  %p665_p11 = por %p664_p12, %p663_p4 }
  0x26   : > { %p666_p6 = pnand %p665_p11, %p659_p2 }
  0x28   : > { %669 = shalt.err (!%p666_p6)
}
  0x29   : > { %587 = dma.hbm_to_vmem [thread:$0]  (!%p837_p13), %s833_s12, 128, %s841_s14, %s188_s16  }
  0x2a   : > { %p978_p9 = scmp.lt.s32.totalorder %s734_s21, 3  ;;  %p979_p7 = scmp.ge.s32.totalorder %s734_s21, 1 }
  0x2c   : > { %p204_p0 = pnand %p979_p7, %p978_p9 }
  0x2d   : > { %s868_s13 = sand.u32 (!%p204_p0), 1, %s726_s19   ;;  %p980_p6 = scmp.ne.s32.totalorder (!%p204_p0), %s974_s29, 0 }
  0x2e   : > { %207 = sbr.rel (%p204_p0) target bundleno = 506 (0x1fa), region = 40  ;;  %s521_s17 = sshll.u32 (!%p204_p0), %s868_s13, 3 }
  0x2f   : > { %s210_s23 = scalar_lea.sflag (!%p204_p0), [#allocation3], %s868_s13  ;;  %s213_s15 = scalar_lea.vmem (!%p204_p0), [#allocation2], %s521_s17 }
  0x33   : > { %713 = dma.done.wait (%p980_p6), %s210_s23, 128  }
  0x34   : > { %715 = vsyncadd (%p980_p6), %s210_s23, 4294967168  ;;  %v737_v0 = vmov 0.0   ;;  %vm738_vm0 = vmmov 0   ;;  %v628_v1 = vld [vmem:[%s966_s1 + $0x8] sm:$0xff]   ;;  %v629_v2 = vld [vmem:[%s966_s1] sm:$0xff]   ;;  %vm266_vm1 = vcmask 261120  }
  0x35   : > { %552 = vmatprep.subr.bf16.mxu0 %v737_v0  ;;  %556 = vmatprep.mubr.msk.bf16.mxu0 %vm738_vm0, %v737_v0  ;;  %v241_v3 = vld [vmem:[%s213_s15] sm:$0xff]  ;;  %v630_v5 = vld [vmem:[%s968_s3 + $0x38] sm:$0xff]   ;;  %v631_v6 = vld [vmem:[%s968_s3 + $0x30] sm:$0xff]   ;;  %s537_s10 = sshll.u32 %s791_s22, 7  ;;  %s239_s11 = scalar_lea.vmem [#allocation5], %s521_s17 }
  0x36   : > { %560 = vmatprep.subr.bf16.mxu1 %v737_v0  ;;  %576 = vmatprep.mubr.msk.bf16.mxu1 %vm738_vm0, %v737_v0  ;;  %v242_v4 = vpack.c.bf16 %v241_v3, %v241_v3  ;;  %v632_v7 = vld [vmem:[%s968_s3 + $0x28] sm:$0xff]   ;;  %v633_v8 = vld [vmem:[%s968_s3 + $0x20] sm:$0xff]   ;;  %v634_v9 = vld [vmem:[%s968_s3 + $0x18] sm:$0xff]   ;;  %s445_s23 = sshll.u32 %s239_s11, 4  ;;  %s921_s14 = scalar_lea.hbm %s970_s5, %s537_s10  ;;  %s923_s23 = int_to_ptr.vmem [resolvable:$true] %s445_s23 }
  0x37   : > { %553 = vmatpush3.bf16.msra.mxu0 %v628_v1  ;;  %561 = vmatpush3.bf16.msra.mxu1 %v630_v5  ;;  %v635_v10 = vld [vmem:[%s968_s3 + $0x10] sm:$0xff]   ;;  %v636_v11 = vld [vmem:[%s968_s3 + $0x8] sm:$0xff]   ;;  %v637_v12 = vld [vmem:[%s968_s3] sm:$0xff]   ;;  %s432_s22 = scalar_lea.sflag [#allocation4], %s868_s13  ;;  %s670_s17 = scalar_lea.vmem %s923_s23, 128 }
  0x38   : > { %554 = vmatprep.subr.bf16.mxu0 %v737_v0  ;;  %562 = vmatprep.subr.bf16.mxu1 %v737_v0  ;;  %v523_v13 = vld [vmem:[%s967_s2] ss:$0 sm:$0xff]  ;;  %p671_p11 = scmp.ne.s32.totalorder %s923_s23, %s670_s17  ;;  %p981_p12 = scmp.ne.s32.totalorder %s975_s30, 0 }
  0x39   : > { %v527_v26 = vld [vmem:[%s969_s4] ss:$0 sm:$0xff]  ;;  %s739_s16 = smov [#allocation5]  }
  0x3a   : > { %p672_p13 = pnand %p671_p11, %p981_p12  ;;  %s674_s25 = sshll.u32 %s739_s16, 4  ;;  %s675_s25 = int_to_ptr.vmem [resolvable:$false] %s674_s25 }
  0x3b   : > { %555 = vmatpush3.bf16.msra.mxu0 %v629_v2  ;;  %563 = vmatpush3.bf16.msra.mxu1 %v631_v6  ;;  %s676_s29 = scalar_lea.vmem %s675_s25, 256  ;;  %p677_p3 = scmp.lt.s32.totalorder %s923_s23, %s675_s25 }
  0x3c   : > { %564 = vmatprep.subr.bf16.mxu1 %v737_v0  ;;  %p673_p1 = pneg %p672_p13  ;;  %p678_p5 = scmp.lt.s32.totalorder %s676_s29, %s670_s17 }
  0x3e   : > { %557 = vmatmul.mubr.msk.bf16.vlgmr.msra.gmra.mxu0 %vm266_vm1, %v242_v4  ;;  %p679_p8 = por %p678_p5, %p677_p3 }
  0x3f   : > { %565 = vmatpush3.bf16.msra.mxu1 %v632_v7 }
  0x40   : > { %566 = vmatprep.subr.bf16.mxu1 %v737_v0  ;;  %p680_p10 = pnand %p679_p8, %p673_p1 }
  0x43   : > { %567 = vmatpush3.bf16.msra.mxu1 %v633_v8 }
  0x44   : > { %568 = vmatprep.subr.bf16.mxu1 %v737_v0 }
  0x47   : > { %569 = vmatpush3.bf16.msra.mxu1 %v634_v9 }
  0x48   : > { %570 = vmatprep.subr.bf16.mxu1 %v737_v0 }
  0x4b   : > { %571 = vmatpush3.bf16.msra.mxu1 %v635_v10 }
  0x4c   : > { %572 = vmatprep.subr.bf16.mxu1 %v737_v0 }
  0x4f   : > { %573 = vmatpush3.bf16.msra.mxu1 %v636_v11 }
  0x50   : > { %574 = vmatprep.subr.bf16.mxu1 %v737_v0 }
  0x53   : > { %575 = vmatpush3.bf16.msra.mxu1 %v637_v12 }
  0xfe   : > { %v304_v14 = vpop.f32.mrf.mxu0 }
  0xff   : > { %v305_v15 = vadd.f32 %v523_v13, %v304_v14 }
 0x100   : > { %v558_v16 = vpop.f32.mrf.mxu0 }
 0x101   : > { %v310_v17 = vmul.f32 -1.702, %v305_v15 }
 0x102   : > { %v307_v18 = vpop.f32.mrf.mxu0 }
 0x103   : > { %v311_v19 = vmul.f32 1.442695, %v310_v17 }
 0x104   : > { %v559_v20 = vpop.f32.mrf.mxu0 }
 0x105   : > { %638 = vpow2.f32 %v311_v19 }
 0x112   : > { %v639_v21 = vpop.eup %638 }
 0x113   : > { %v313_v22 = vadd.f32 1.0, %v639_v21 }
 0x115   : > { %640 = vrcp.f32 %v313_v22 }
 0x122   : > { %v641_v23 = vpop.eup %640 }
 0x123   : > { %v316_v24 = vmul.f32 %v641_v23, %v305_v15 }
 0x125   : > { %v317_v25 = vpack.c.bf16 %v316_v24, %v316_v24 }
 0x127   : > { %577 = vmatmul.mubr.bf16.vlgmr.msra.gmra.mxu1 %v317_v25 }
 0x1e7   : > { %v423_v27 = vpop.f32.mrf.mxu1 }
 0x1e8   : > { %v424_v28 = vadd.f32 %v527_v26, %v423_v27 }
 0x1e9   : > { %v578_v29 = vpop.f32.mrf.mxu1 }
 0x1ea   : > { %v429_v30 = vadd.f32 %v424_v28, %v241_v3 }
 0x1eb   : > { %v426_v31 = vpop.f32.mrf.mxu1 }
 0x1ec   : > { %430 = vst.msk [vmem:[%s239_s11] sm:$0xff] %vm266_vm1, %v429_v30 }
 0x1ed   : > { %v579_v32 = vpop.f32.mrf.mxu1 }
 0x1ee   : > { %683 = shalt.err (!%p680_p10)
}
 0x1ef   : > { %s684_s26 = scalar_lea.hbm %s921_s14, 128  ;;  %s688_s8 = scalar_lea.hbm %s970_s5, 256 }
 0x1f0   : > { %p685_p2 = scmp.ne.s32.totalorder %s921_s14, %s684_s26  ;;  %p689_p7 = scmp.lt.s32.totalorder %s921_s14, %s970_s5 }
 0x1f1   : > { %p690_p0 = scmp.lt.s32.totalorder %s688_s8, %s684_s26 }
 0x1f2   : > { %p686_p4 = pnand %p685_p2, %p981_p12 }
 0x1f3   : > { %p691_p6 = por %p690_p0, %p689_p7 }
 0x1f4   : > { %p687_p9 = pneg %p686_p4 }
 0x1f6   : > { %p692_p11 = pnand %p691_p6, %p687_p9 }
 0x1f8   : > { %695 = shalt.err (!%p692_p11)
}
 0x1f9   : > { %582 = dma.vmem_to_hbm [thread:$0]  (%p981_p12), %s923_s23, 128, %s921_s14, %s432_s22  }
 0x1fa PF: > { %s457_s10 = sand.u32 1, %s722_s18   ;;  %p982_p13 = scmp.ne.s32.totalorder %s976_s6, 0 }
 0x1fb   : > { %p983_p1 = scmp.ge.s32.totalorder %s734_s21, 2  ;;  %s458_s11 = scalar_lea.sflag [#allocation4], %s457_s10 }
 0x1fd   : > { %p589_p3 = pnand %p983_p1, %p982_p13 }
 0x1ff   : > { %p590_p5 = pneg %p589_p3 }
 0x201   : > { %717 = dma.done.wait (%p590_p5), %s458_s11, 128  }
 0x202   : > { %719 = vsyncadd (%p590_p5), %s458_s11, 4294967168  ;;  %p18_p8 = scmp.ge.s32.totalorder %s795_s24, 4   ;;  %s984_s18 = smov %s726_s19 }
 0x203   : > { %s985_s19 = smov %s730_s20  ;;  %s986_s20 = smov %s807_s27 }
 0x204   : > { %s987_s21 = smov %s795_s24  ;;  %20 = sbr.rel (!%p18_p8) target bundleno = 5 (0x5), region = 85 }
 0x209   :  { %463 = vsyncpa [#allocation3], 1 }
 0x20a   :  { %465 = vsyncpa [#allocation3 + $0x1], 1 }
 0x20b   :  { %466 = vsyncpa [#allocation4], 1 }
 0x20c   :  { %468 = vsyncpa [#allocation4 + $0x1], 1 }

</bundles_post_ra>
